<compile_context>
chip_gen: v5e
topology: v5e:2x2
jax: 0.10.0
libtpu: 0.0.40
codegen_flags: <defaults>
</compile_context>

<pallas_src>
import functools

import jax
import jax.numpy as jnp
from jax.experimental import pallas as pl
from jax.experimental.pallas import tpu as pltpu


def _round_up(a, m):
    return ((a + m - 1) // m) * m


def pfl_mlp_kernel(xt_ref, w1t_ref, b1t_ref, w2t_ref, b2t_ref, w3t_ref, b3t_ref, ot_ref):
    """Feature-major MLP: all activations are (features, batch_tile)."""
    xt = xt_ref[...]                     # (in_dim, TB) f32, in_dim = n_obj-1 (tiny)
    w1t = w1t_ref[...]                   # (H, in_dim)  f32
    in_dim = xt.shape[0]

    # --- fc1 + ReLU: rank-1 updates on the VPU (contraction dim is far too small
    #     for the MXU).  x rows broadcast along sublanes (cheap stride-0 reads).
    acc = w1t[:, 0:1] * xt[0:1, :]                       # (H, TB)
    for j in range(1, in_dim):                           # static unroll, in_dim tiny
        acc = acc + w1t[:, j:j + 1] * xt[j:j + 1, :]
    h1 = jnp.maximum(acc + b1t_ref[...], 0.0)            # (H, TB) f32

    # --- fc2 + ReLU: bf16 MXU matmul, f32 accumulation, bias/ReLU in f32.
    h2 = jnp.dot(w2t_ref[...], h1.astype(jnp.bfloat16),
                 preferred_element_type=jnp.float32) + b2t_ref[...]
    h2 = jnp.maximum(h2, 0.0)                            # (H, TB) f32

    # --- fc3: bf16 MXU matmul into the compact (n_obj_pad, TB) output block.
    o = jnp.dot(w3t_ref[...], h2.astype(jnp.bfloat16),
                preferred_element_type=jnp.float32) + b3t_ref[...]
    ot_ref[...] = o                                      # (n_obj_pad, TB) f32


@functools.partial(jax.jit, static_argnames=("n_obj", "block_batch", "core_parallel"))
def pfl_model_forward(x, prep, *, n_obj, block_batch=4096, core_parallel=False):
    """x: (batch, n_obj-1) f32.  prep: output of prepare_params() (done once)."""
    w1t, b1t, w2t, b2t, w3t, b3t = (prep[k] for k in
                                    ("w1t", "b1t", "w2t", "b2t", "w3t", "b3t"))
    batch, in_dim = x.shape
    hidden = w1t.shape[0]
    n_obj_pad = w3t.shape[0]

    # Batch tile: multiple of 128 (lane-dense), capped by block_batch.
    tb = min(_round_up(block_batch, 128), _round_up(batch, 128))
    padded_batch = _round_up(batch, tb)

    # Feature-major x; pad the batch (lane) dim only if needed (tiny: 8 B/row).
    xt = x.T
    if padded_batch != batch:
        xt = jnp.zeros((in_dim, padded_batch), x.dtype).at[:, :batch].set(xt)

    grid = (padded_batch // tb,)
    resident = lambda shape: pl.BlockSpec(shape, lambda i: (0, 0))

    flops = 2 * batch * (in_dim * hidden + hidden * hidden + hidden * n_obj)
    bytes_accessed = int(
        x.size * x.dtype.itemsize
        + sum(int(prep[k].size) * prep[k].dtype.itemsize for k in prep)
        + n_obj_pad * padded_batch * 4)

    dims_sem = (pltpu.CORE_PARALLEL,) if core_parallel else ("parallel",)

    out_t = pl.pallas_call(
        pfl_mlp_kernel,
        out_shape=jax.ShapeDtypeStruct((n_obj_pad, padded_batch), jnp.float32),
        grid=grid,
        in_specs=[
            pl.BlockSpec((in_dim, tb), lambda i: (0, i)),   # x tile (pipelined)
            resident((hidden, in_dim)),                     # w1^T (f32, tiny)
            resident((hidden, 1)),                          # b1^T
            resident((hidden, hidden)),                     # w2^T (bf16)
            resident((hidden, 1)),                          # b2^T
            resident((n_obj_pad, hidden)),                  # w3^T padded (bf16)
            resident((n_obj_pad, 1)),                       # b3^T padded
        ],
        out_specs=pl.BlockSpec((n_obj_pad, tb), lambda i: (0, i)),
        compiler_params=pltpu.CompilerParams(dimension_semantics=dims_sem),
        cost_estimate=pl.CostEstimate(flops=flops, transcendentals=0,
                                      bytes_accessed=bytes_accessed),
    )(xt, w1t, b1t, w2t, b2t, w3t, b3t)

    # Compact (n_obj_pad, padded_batch) result -> (batch, n_obj); trivial read.
    return out_t[:n_obj, :batch].T


def init_params(key, n_obj, hidden=128):
    """PyTorch-style Linear init; weights stored as (in_features, out_features)."""
    in_dim = n_obj - 1
    k = jax.random.split(key, 6)

    def linear(kw, kb, fan_in, fan_out):
        bound = 1.0 / jnp.sqrt(jnp.float32(fan_in))
        w = jax.random.uniform(kw, (fan_in, fan_out), jnp.float32, -bound, bound)
        b = jax.random.uniform(kb, (1, fan_out), jnp.float32, -bound, bound)
        return w, b

    w1, b1 = linear(k[0], k[1], in_dim, hidden)
    w2, b2 = linear(k[2], k[3], hidden, hidden)
    w3, b3 = linear(k[4], k[5], hidden, n_obj)
    return {"w1": w1, "b1": b1, "w2": w2, "b2": b2, "w3": w3, "b3": b3}


def prepare_params(params, n_obj):
    """One-time (hoisted out of the jitted forward) weight prep for the kernel:
    transpose to feature-major, pad fc3 outputs to a sublane multiple (8), and
    cast the MXU-layer weights to bf16."""
    hidden = params["w2"].shape[0]
    n_obj_pad = _round_up(n_obj, 8)
    w1t = params["w1"].T                                           # (H, in_dim) f32
    b1t = params["b1"].reshape(1, hidden).T                        # (H, 1) f32
    w2t = params["w2"].T.astype(jnp.bfloat16)                      # (H, H) bf16
    b2t = params["b2"].reshape(1, hidden).T                        # (H, 1) f32
    w3t = (jnp.zeros((n_obj_pad, hidden), jnp.float32)
           .at[:n_obj].set(params["w3"].T).astype(jnp.bfloat16))   # (8, H) bf16
    b3t = (jnp.zeros((n_obj_pad, 1), jnp.float32)
           .at[:n_obj, 0].set(params["b3"].reshape(-1)))           # (8, 1) f32
    return {"w1t": w1t, "b1t": b1t, "w2t": w2t, "b2t": b2t, "w3t": w3t, "b3t": b3t}


if __name__ == "__main__":
    key = jax.random.PRNGKey(0)
    n_obj = 3            # => fc1 input dim is n_obj - 1 = 2
    batch = 300          # not a multiple of the tile to exercise padding/tiling

    kx, kp = jax.random.split(key)
    x = jax.random.uniform(kx, (batch, n_obj - 1), jnp.float32)
    params = init_params(kp, n_obj)
    prep = prepare_params(params, n_obj)   # one-time weight prep (not per forward)

    # Small block_batch so the grid has several steps even at this test size.
    out = pfl_model_forward(x, prep, n_obj=n_obj, block_batch=128)
    out = jax.block_until_ready(out)

    # Pure-JAX references.
    def ref_f32(x, p):
        h = jnp.maximum(x @ p["w1"] + p["b1"], 0.0)
        h = jnp.maximum(h @ p["w2"] + p["b2"], 0.0)
        return h @ p["w3"] + p["b3"]

    def ref_bf16(x, p):  # mimic the kernel's bf16-input / f32-accumulate matmuls
        f32 = lambda a: a.astype(jnp.bfloat16).astype(jnp.float32)
        h = jnp.maximum(x @ p["w1"] + p["b1"], 0.0)
        h = jnp.maximum(f32(h) @ f32(p["w2"]) + p["b2"], 0.0)
        return f32(h) @ f32(p["w3"]) + p["b3"]

    assert out.shape == (batch, n_obj)
    assert jnp.allclose(out, ref_bf16(x, params), atol=2e-3, rtol=2e-3)
    assert jnp.allclose(out, ref_f32(x, params), atol=3e-2, rtol=3e-2)
    print("KERNEL_OK")
</pallas_src>

<mosaic_0001>
module attributes {stable_mosaic.version = 11 : i64} {
  func.func @pfl_mlp_kernel(%arg0: i32, %arg1: memref<2x128xf32, #tpu.memory_space<vmem>>, %arg2: memref<128x2xf32, #tpu.memory_space<vmem>>, %arg3: memref<128x1xf32, #tpu.memory_space<vmem>>, %arg4: memref<128x128xbf16, #tpu.memory_space<vmem>>, %arg5: memref<128x1xf32, #tpu.memory_space<vmem>>, %arg6: memref<8x128xbf16, #tpu.memory_space<vmem>>, %arg7: memref<8x1xf32, #tpu.memory_space<vmem>>, %arg8: memref<8x128xf32, #tpu.memory_space<vmem>>) attributes {dimension_semantics = [#tpu.dimension_semantics<parallel>], iteration_bounds = array<i64: 3>, scalar_prefetch = 0 : i64, scratch_operands = 0 : i64, tpu.core_type = #tpu.core_type<tc>, window_params = [{transform_indices = @transform_0, window_bounds = array<i64: 2, 128>}, {pipeline_mode = #tpu.pipeline_mode<synchronous>, transform_indices = @transform_1, window_bounds = array<i64: 128, 2>}, {pipeline_mode = #tpu.pipeline_mode<synchronous>, transform_indices = @transform_2, window_bounds = array<i64: 128, 1>}, {pipeline_mode = #tpu.pipeline_mode<synchronous>, transform_indices = @transform_3, window_bounds = array<i64: 128, 128>}, {pipeline_mode = #tpu.pipeline_mode<synchronous>, transform_indices = @transform_4, window_bounds = array<i64: 128, 1>}, {pipeline_mode = #tpu.pipeline_mode<synchronous>, transform_indices = @transform_5, window_bounds = array<i64: 8, 128>}, {pipeline_mode = #tpu.pipeline_mode<synchronous>, transform_indices = @transform_6, window_bounds = array<i64: 8, 1>}, {transform_indices = @transform_7, window_bounds = array<i64: 8, 128>}]} {
    %c0 = arith.constant 0 : index
    %c0_0 = arith.constant 0 : index
    %0 = vector.load %arg1[%c0, %c0_0] : memref<2x128xf32, #tpu.memory_space<vmem>>, vector<2x128xf32>
    %c0_1 = arith.constant 0 : index
    %c0_2 = arith.constant 0 : index
    %1 = vector.load %arg2[%c0_1, %c0_2] : memref<128x2xf32, #tpu.memory_space<vmem>>, vector<128x2xf32>
    %2 = vector.extract_strided_slice %1 {offsets = [0, 0], sizes = [128, 1], strides = [1, 1]} : vector<128x2xf32> to vector<128x1xf32>
    %3 = vector.extract_strided_slice %0 {offsets = [0, 0], sizes = [1, 128], strides = [1, 1]} : vector<2x128xf32> to vector<1x128xf32>
    %4 = vector.broadcast %2 : vector<128x1xf32> to vector<128x128xf32>
    %5 = vector.broadcast %3 : vector<1x128xf32> to vector<128x128xf32>
    %6 = arith.mulf %4, %5 : vector<128x128xf32>
    %7 = vector.extract_strided_slice %1 {offsets = [0, 1], sizes = [128, 1], strides = [1, 1]} : vector<128x2xf32> to vector<128x1xf32>
    %8 = vector.extract_strided_slice %0 {offsets = [1, 0], sizes = [1, 128], strides = [1, 1]} : vector<2x128xf32> to vector<1x128xf32>
    %9 = vector.broadcast %7 : vector<128x1xf32> to vector<128x128xf32>
    %10 = vector.broadcast %8 : vector<1x128xf32> to vector<128x128xf32>
    %11 = arith.mulf %9, %10 : vector<128x128xf32>
    %12 = arith.addf %6, %11 : vector<128x128xf32>
    %c0_3 = arith.constant 0 : index
    %c0_4 = arith.constant 0 : index
    %13 = vector.load %arg3[%c0_3, %c0_4] : memref<128x1xf32, #tpu.memory_space<vmem>>, vector<128x1xf32>
    %14 = vector.broadcast %13 : vector<128x1xf32> to vector<128x128xf32>
    %15 = arith.addf %12, %14 : vector<128x128xf32>
    %cst = arith.constant 0.000000e+00 : f32
    %16 = vector.broadcast %cst : f32 to vector<128x128xf32>
    %17 = arith.maximumf %15, %16 : vector<128x128xf32>
    %c0_5 = arith.constant 0 : index
    %c0_6 = arith.constant 0 : index
    %18 = vector.load %arg4[%c0_5, %c0_6] : memref<128x128xbf16, #tpu.memory_space<vmem>>, vector<128x128xbf16>
    %19 = arith.truncf %17 : vector<128x128xf32> to vector<128x128xbf16>
    %cst_7 = arith.constant dense<0.000000e+00> : vector<128x128xf32>
    %20 = tpu.matmul %18, %19, %cst_7 {dimension_numbers = #tpu.dot_dimension_numbers<[1], [0], [0], [1], [0, 0, 1, 1], [], []>} : vector<128x128xbf16>, vector<128x128xbf16>, vector<128x128xf32> -> vector<128x128xf32>
    %c0_8 = arith.constant 0 : index
    %c0_9 = arith.constant 0 : index
    %21 = vector.load %arg5[%c0_8, %c0_9] : memref<128x1xf32, #tpu.memory_space<vmem>>, vector<128x1xf32>
    %22 = vector.broadcast %21 : vector<128x1xf32> to vector<128x128xf32>
    %23 = arith.addf %20, %22 : vector<128x128xf32>
    %cst_10 = arith.constant 0.000000e+00 : f32
    %24 = vector.broadcast %cst_10 : f32 to vector<128x128xf32>
    %25 = arith.maximumf %23, %24 : vector<128x128xf32>
    %c0_11 = arith.constant 0 : index
    %c0_12 = arith.constant 0 : index
    %26 = vector.load %arg6[%c0_11, %c0_12] : memref<8x128xbf16, #tpu.memory_space<vmem>>, vector<8x128xbf16>
    %27 = arith.truncf %25 : vector<128x128xf32> to vector<128x128xbf16>
    %cst_13 = arith.constant dense<0.000000e+00> : vector<8x128xf32>
    %28 = tpu.matmul %26, %27, %cst_13 {dimension_numbers = #tpu.dot_dimension_numbers<[1], [0], [0], [1], [0, 0, 1, 1], [], []>} : vector<8x128xbf16>, vector<128x128xbf16>, vector<8x128xf32> -> vector<8x128xf32>
    %c0_14 = arith.constant 0 : index
    %c0_15 = arith.constant 0 : index
    %29 = vector.load %arg7[%c0_14, %c0_15] : memref<8x1xf32, #tpu.memory_space<vmem>>, vector<8x1xf32>
    %30 = vector.broadcast %29 : vector<8x1xf32> to vector<8x128xf32>
    %31 = arith.addf %28, %30 : vector<8x128xf32>
    %c0_16 = arith.constant 0 : index
    %c0_17 = arith.constant 0 : index
    %32 = vector.load %arg8[%c0_16, %c0_17] : memref<8x128xf32, #tpu.memory_space<vmem>>, vector<8x128xf32>
    tpu.vector_store %arg8[%c0_16, %c0_17], %31 {strides = array<i32>} : memref<8x128xf32, #tpu.memory_space<vmem>>, vector<8x128xf32>,
    return
  }
  func.func @transform_0(%arg0: i32) -> (i32, i32) {
    %c0_i32 = arith.constant 0 : i32
    %c0_i32_0 = arith.constant 0 : i32
    return %c0_i32, %arg0 : i32, i32
  }
  func.func @transform_1(%arg0: i32) -> (i32, i32) {
    %c0_i32 = arith.constant 0 : i32
    %c0_i32_0 = arith.constant 0 : i32
    %c0_i32_1 = arith.constant 0 : i32
    return %c0_i32, %c0_i32_0 : i32, i32
  }
  func.func @transform_2(%arg0: i32) -> (i32, i32) {
    %c0_i32 = arith.constant 0 : i32
    %c0_i32_0 = arith.constant 0 : i32
    %c0_i32_1 = arith.constant 0 : i32
    return %c0_i32, %c0_i32_0 : i32, i32
  }
  func.func @transform_3(%arg0: i32) -> (i32, i32) {
    %c0_i32 = arith.constant 0 : i32
    %c0_i32_0 = arith.constant 0 : i32
    %c0_i32_1 = arith.constant 0 : i32
    return %c0_i32, %c0_i32_0 : i32, i32
  }
  func.func @transform_4(%arg0: i32) -> (i32, i32) {
    %c0_i32 = arith.constant 0 : i32
    %c0_i32_0 = arith.constant 0 : i32
    %c0_i32_1 = arith.constant 0 : i32
    return %c0_i32, %c0_i32_0 : i32, i32
  }
  func.func @transform_5(%arg0: i32) -> (i32, i32) {
    %c0_i32 = arith.constant 0 : i32
    %c0_i32_0 = arith.constant 0 : i32
    %c0_i32_1 = arith.constant 0 : i32
    return %c0_i32, %c0_i32_0 : i32, i32
  }
  func.func @transform_6(%arg0: i32) -> (i32, i32) {
    %c0_i32 = arith.constant 0 : i32
    %c0_i32_0 = arith.constant 0 : i32
    %c0_i32_1 = arith.constant 0 : i32
    return %c0_i32, %c0_i32_0 : i32, i32
  }
  func.func @transform_7(%arg0: i32) -> (i32, i32) {
    %c0_i32 = arith.constant 0 : i32
    %c0_i32_0 = arith.constant 0 : i32
    return %c0_i32, %arg0 : i32, i32
  }
}

</mosaic_0001>

<bundles_post_ra>
// kernel: pfl_model_forward.1
= control target key start
LH: loop header
LB: loop body
LE: loop exit
PB: predicated region body
PF: predicated region fallthrough
CT: control target
= control target key end

     0   :  { %s1078_s24 = smov 0   ;;  %s1359_s0 = inlined_call_operand.vmem [shape: f32[2,384], index: 0, kind: input, shape index: {}]   ;;  %s1360_s1 = inlined_call_operand.vmem [shape: f32[128,2], index: 1, kind: input, shape index: {}]   ;;  %s1361_s2 = inlined_call_operand.vmem [shape: f32[128,1], index: 2, kind: input, shape index: {}]   ;;  %s1362_s3 = inlined_call_operand.vmem [shape: bf16[128,128], index: 3, kind: input, shape index: {}]   ;;  %s1363_s4 = inlined_call_operand.vmem [shape: f32[128,1], index: 4, kind: input, shape index: {}]   ;;  %s1364_s5 = inlined_call_operand.vmem [shape: bf16[8,128], index: 5, kind: input, shape index: {}]   ;;  %s1365_s6 = inlined_call_operand.vmem [shape: f32[8,1], index: 6, kind: input, shape index: {}]   ;;  %s1366_s7 = inlined_call_operand.vmem [shape: f32[8,384], index: 7, kind: output, shape index: {}]  }
   0x1 LB: > { %s928_s25 = sadd.s32 4294967295, %s1034_s24   ;;  %p932_p0 = scmp.ge.s32.totalorder %s1034_s24, 1  ;;  %s1034_s24 = sphi %s1078_s24, %s17_s24  }
   0x2   : > { %p236_p1 = scmp.lt.s32.totalorder %s1034_s24, 4 }
   0x4   : > { %p237_p2 = pnand %p932_p0, %p236_p1 }
   0x5   : > { %p266_p3 = scmp.lt.s32.totalorder (!%p237_p2), %s928_s25, 2 }
   0x6   : > { %240 = sbr.rel (%p237_p2) target bundleno = 626 (0x272), region = 48 }
   0xb   : > { %v289_v0 = vld [vmem:[%s1360_s1 + $0x70] sm:$0xff]  ;;  %v287_v1 = vld [vmem:[%s1360_s1 + $0x60] sm:$0xff]  ;;  %v1036_v2 = vmov 1   ;;  %v1037_v3 = vmov 0   ;;  %v290_v4 = vld [vmem:[%s1360_s1 + $0x78] sm:$0xff]  ;;  %s1368_s25 = smov (!%p266_p3, %s928_s25), 2 }
   0xc   : > { %1005 = vset.pattern.permute.xlu0 %v1036_v2  ;;  %1003 = vset.pattern.permute.xlu1 %v1036_v2  ;;  %v288_v5 = vld [vmem:[%s1360_s1 + $0x68] sm:$0xff]  ;;  %v499_v7 = vld [vmem:[%s1361_s2 + $0x70] sm:$0xff]  ;;  %v500_v10 = vld [vmem:[%s1361_s2 + $0x78] sm:$0xff]  ;;  %s933_s29 = sshll.u32 %s1368_s25, 1  ;;  %s934_s18 = sshll.u32 %s1368_s25, 3 }
   0xd   : > { %1004 = vset.pattern.permute.xlu2 %v1037_v3  ;;  %445 = vperm.xlu1 %1003, %v289_v0   ;;  %v284_v6 = vld [vmem:[%s1360_s1 + $0x48] sm:$0xff]  ;;  %v281_v8 = vld [vmem:[%s1360_s1 + $0x30] sm:$0xff]  ;;  %v286_v11 = vld [vmem:[%s1360_s1 + $0x58] sm:$0xff]  ;;  %s269_s9 = scalar_lea.vmem %s1359_s0, %s933_s29  ;;  %s273_s21 = scalar_lea.vmem %s1366_s7, %s934_s18 }
   0xe   : > { %437 = vperm.xlu0 %1005, %v287_v1   ;;  %353 = vperm.xlu2 %1004, %v287_v1   ;;  %v285_v9 = vld [vmem:[%s1360_s1 + $0x50] sm:$0xff]  ;;  %v498_v12 = vld [vmem:[%s1361_s2 + $0x68] sm:$0xff]  ;;  %v497_v13 = vld [vmem:[%s1361_s2 + $0x60] sm:$0xff] }
   0xf   : > { %v283_v14 = vld [vmem:[%s1360_s1 + $0x40] sm:$0xff]  ;;  %v494_v15 = vld [vmem:[%s1361_s2 + $0x48] sm:$0xff]  ;;  %v495_v16 = vld [vmem:[%s1361_s2 + $0x50] sm:$0xff] }
  0x10   : > { %v496_v17 = vld [vmem:[%s1361_s2 + $0x58] sm:$0xff]  ;;  %v491_v18 = vld [vmem:[%s1361_s2 + $0x30] sm:$0xff]  ;;  %v493_v21 = vld [vmem:[%s1361_s2 + $0x40] sm:$0xff] }
  0x11   : > { %v282_v19 = vld [vmem:[%s1360_s1 + $0x38] sm:$0xff]  ;;  %v489_v22 = vld [vmem:[%s1361_s2 + $0x20] sm:$0xff]  ;;  %v280_v23 = vld [vmem:[%s1360_s1 + $0x28] sm:$0xff] }
  0x12   : > { %v278_v20 = vld [vmem:[%s1360_s1 + $0x18] sm:$0xff]  ;;  %v279_v24 = vld [vmem:[%s1360_s1 + $0x20] sm:$0xff]  ;;  %v276_v25 = vld [vmem:[%s1360_s1 + $0x8] sm:$0xff] }
  0x13   : > { %v487_v27 = vld [vmem:[%s1361_s2 + $0x10] sm:$0xff]  ;;  %v492_v30 = vld [vmem:[%s1361_s2 + $0x38] sm:$0xff]  ;;  %v486_v31 = vld [vmem:[%s1361_s2 + $0x8] sm:$0xff] }
  0x14   : > { %v277_v29 = vld [vmem:[%s1360_s1 + $0x10] sm:$0xff]  ;;  %v649_v33 = vld [vmem:[%s1363_s4 + $0x60] sm:$0xff]  ;;  %v490_v38 = vld [vmem:[%s1361_s2 + $0x28] sm:$0xff] }
  0x15   : > { %449 = vperm.xlu1 %1003, %v290_v4   ;;  %v275_v37 = vld [vmem:[%s1360_s1] sm:$0xff]  ;;  %v648_v39 = vld [vmem:[%s1363_s4 + $0x58] sm:$0xff]  ;;  %v643_v43 = vld [vmem:[%s1363_s4 + $0x30] sm:$0xff] }
  0x16   : > { %358 = vperm.xlu2 %1004, %v288_v5   ;;  %425 = vperm.xlu0 %1005, %v284_v6   ;;  %v642_v47 = vld [vmem:[%s1363_s4 + $0x28] sm:$0xff]  ;;  %v485_v48 = vld [vmem:[%s1361_s2] sm:$0xff]  ;;  %v488_v49 = vld [vmem:[%s1361_s2 + $0x18] sm:$0xff] }
  0x17   : > { %v274_v50 = vld [vmem:[%s269_s9] sm:$0x3]  ;;  %v652_v58 = vld [vmem:[%s1363_s4 + $0x78] sm:$0xff]  ;;  %v651_v60 = vld [vmem:[%s1363_s4 + $0x70] sm:$0xff] }
  0x18   : > { %v1243_v53 = vperm.slane %v274_v50, 0  ;;  %v1245_v54 = vperm.slane %v274_v50, 1  ;;  %v637_v57 = vld [vmem:[%s1363_s4] sm:$0xff] }
  0x1d   : > { %441 = vperm.xlu1 %1003, %v288_v5  }
  0x1e   : > { %573 = vperm.xlu2 %1004, %v499_v7   ;;  %413 = vperm.xlu0 %1005, %v281_v8  }
  0x25   : > { %1006 = vset.pattern.permute.xlu1 %v1037_v3 }
  0x26   : > { %343 = vperm.xlu2 %1004, %v285_v9   ;;  %1013 = vset.pattern.permute.xlu0 %v1037_v3 }
  0x27   : > { %578 = vperm.xlu1 %1006, %v500_v10   ;;  %363 = vperm.xlu0 %1013, %v289_v0  }
  0x2e   : > { %1008 = vset.pattern.permute.xlu2 %v1036_v2 }
  0x2f   : > { %1007 = vset.pattern.permute.xlu1 %v1036_v2  ;;  %433 = vperm.xlu2 %1008, %v286_v11  }
  0x30   : > { %368 = vperm.xlu0 %1013, %v290_v4   ;;  %429 = vperm.xlu1 %1007, %v285_v9   ;;  %v647_v9 = vld [vmem:[%s1363_s4 + $0x50] sm:$0xff] }
  0x37   : > { %1010 = vset.pattern.permute.xlu2 %v1037_v3 }
  0x38   : > { %348 = vperm.xlu0 %1013, %v286_v11   ;;  %1009 = vset.pattern.permute.xlu1 %v1037_v3 }
  0x39   : > { %568 = vperm.xlu2 %1010, %v498_v12   ;;  %563 = vperm.xlu1 %1009, %v497_v13   ;;  %v650_v12 = vld [vmem:[%s1363_s4 + $0x68] sm:$0xff] }
  0x40   : > { %333 = vperm.xlu0 %1013, %v283_v14  }
  0x41   : > { %1011 = vset.pattern.permute.xlu2 %v1036_v2  ;;  %338 = vperm.xlu1 %1009, %v284_v6  }
  0x42   : > { %421 = vperm.xlu2 %1011, %v283_v14  }
  0x48   : > { %548 = vperm.xlu0 %1013, %v494_v15  }
  0x49   : > { %553 = vperm.xlu1 %1009, %v495_v16  }
  0x4a   : > { %1012 = vset.pattern.permute.xlu2 %v1037_v3 }
  0x4b   : > { %558 = vperm.xlu2 %1012, %v496_v17  }
  0x50   : > { %533 = vperm.xlu0 %1013, %v491_v18  }
  0x51   : > { %323 = vperm.xlu1 %1009, %v281_v8  }
  0x53   : > { %328 = vperm.xlu2 %1012, %v282_v19  }
  0x58   : > { %308 = vperm.xlu0 %1013, %v278_v20  }
  0x59   : > { %1014 = vset.pattern.permute.xlu1 %v1036_v2 }
  0x5a   : > { %417 = vperm.xlu1 %1014, %v282_v19  }
  0x5b   : > { %543 = vperm.xlu2 %1012, %v493_v21  }
  0x60   : > { %523 = vperm.xlu0 %1013, %v489_v22  }
  0x62   : > { %1015 = vset.pattern.permute.xlu1 %v1037_v3 }
  0x63   : > { %318 = vperm.xlu2 %1012, %v280_v23   ;;  %313 = vperm.xlu1 %1015, %v279_v24  }
  0x68   : > { %298 = vperm.xlu0 %1013, %v276_v25   ;;  %v1171_v26 = vpop.permute.xlu2 %353 }
  0x69   : > { %v384_v6 = vmul.f32 %v1243_v53, %v1171_v26 }
  0x6b   : > { %1017 = vset.pattern.permute.xlu2 %v1036_v2  ;;  %1016 = vset.pattern.permute.xlu1 %v1036_v2 }
  0x6c   : > { %409 = vperm.xlu2 %1017, %v280_v23   ;;  %405 = vperm.xlu1 %1016, %v279_v24   ;;  %v646_v23 = vld [vmem:[%s1363_s4 + $0x48] sm:$0xff]  ;;  %v645_v24 = vld [vmem:[%s1363_s4 + $0x40] sm:$0xff] }
  0x70   : > { %513 = vperm.xlu0 %1013, %v487_v27   ;;  %v1178_v28 = vpop.permute.xlu2 %358 }
  0x74   : > { %1019 = vset.pattern.permute.xlu2 %v1037_v3  ;;  %1018 = vset.pattern.permute.xlu1 %v1037_v3 }
  0x75   : > { %303 = vperm.xlu2 %1019, %v277_v29   ;;  %538 = vperm.xlu1 %1018, %v492_v30  }
  0x78   : > { %508 = vperm.xlu0 %1013, %v486_v31   ;;  %v1191_v32 = vpop.permute.xlu2 %573 }
  0x7d   : > { %1021 = vset.pattern.permute.xlu2 %v1036_v2  ;;  %1020 = vset.pattern.permute.xlu1 %v1036_v2 }
  0x7e   : > { %401 = vperm.xlu2 %1021, %v278_v20   ;;  %397 = vperm.xlu1 %1020, %v277_v29  }
  0x7f   : > { %v446_v34 = vpop.permute.xlu1 %445 }
  0x80   : > { %715 = vperm.xlu0 %1013, %v649_v33   ;;  %v438_v35 = vpop.permute.xlu0 %437  ;;  %v1198_v36 = vpop.permute.xlu2 %343  ;;  %v467_v59 = vmul.f32 %v1245_v54, %v446_v34 }
  0x81   : > { %v465_v7 = vmul.f32 %v1245_v54, %v438_v35 }
  0x83   : > { %v481_v17 = vadd.f32 %v465_v7, %v384_v6 }
  0x86   : > { %1023 = vset.pattern.permute.xlu2 %v1037_v3  ;;  %1022 = vset.pattern.permute.xlu1 %v1037_v3 }
  0x87   : > { %293 = vperm.xlu2 %1023, %v275_v37   ;;  %528 = vperm.xlu1 %1022, %v490_v38   ;;  %v450_v40 = vpop.permute.xlu1 %449  ;;  %v644_v38 = vld [vmem:[%s1363_s4 + $0x38] sm:$0xff] }
  0x88   : > { %710 = vperm.xlu0 %1013, %v648_v39   ;;  %v1211_v41 = vpop.permute.xlu0 %425  ;;  %v468_v1 = vmul.f32 %v1245_v54, %v450_v40  ;;  %v382_v39 = vmul.f32 %v1243_v53, %v1198_v36  ;;  %v640_v36 = vld [vmem:[%s1363_s4 + $0x18] sm:$0xff] }
  0x89   : > { %v1213_v42 = vpop.permute.xlu2 %433  ;;  %v462_v40 = vmul.f32 %v1245_v54, %v1211_v41  ;;  %v639_v41 = vld [vmem:[%s1363_s4 + $0x10] sm:$0xff] }
  0x8a   : > { %v464_v30 = vmul.f32 %v1245_v54, %v1213_v42 }
  0x8f   : > { %1025 = vset.pattern.permute.xlu2 %v1036_v2  ;;  %1024 = vset.pattern.permute.xlu1 %v1036_v2  ;;  %v442_v44 = vpop.permute.xlu1 %441 }
  0x90   : > { %685 = vperm.xlu0 %1013, %v643_v43   ;;  %393 = vperm.xlu2 %1025, %v276_v25   ;;  %v1226_v45 = vpop.permute.xlu0 %413  ;;  %v466_v62 = vmul.f32 %v1245_v54, %v442_v44 }
  0x91   : > { %389 = vperm.xlu1 %1024, %v275_v37   ;;  %v641_v37 = vld [vmem:[%s1363_s4 + $0x20] sm:$0xff]  ;;  %v459_v7 = vmul.f32 %v1245_v54, %v1226_v45 }
  0x93   : > { %v569_v46 = vpop.permute.xlu2 %568 }
  0x98   : > { %680 = vperm.xlu0 %1013, %v642_v47   ;;  %1027 = vset.pattern.permute.xlu2 %v1037_v3 }
  0x99   : > { %1026 = vset.pattern.permute.xlu1 %v1037_v3  ;;  %503 = vperm.xlu2 %1027, %v485_v48   ;;  %v579_v51 = vpop.permute.xlu1 %578  ;;  %v364_v52 = vpop.permute.xlu0 %363  ;;  %v385_v3 = vmul.f32 %v1243_v53, %v1178_v28 }
  0x9a   : > { %518 = vperm.xlu1 %1026, %v488_v49   ;;  %v386_v55 = vmul.f32 %v1243_v53, %v364_v52 }
  0x9b   : > { %v482_v8 = vadd.f32 %v466_v62, %v385_v3  ;;  %v855_v62 = vld [vmem:[%s1365_s6] sm:$0xff] }
  0x9c   : > { %v422_v56 = vpop.permute.xlu2 %421  ;;  %v483_v61 = vadd.f32 %v467_v59, %v386_v55 }
  0x9d   : > { %v594_v15 = vadd.f32 %v569_v46, %v482_v8  ;;  %v461_v31 = vmul.f32 %v1245_v54, %v422_v56 }
  0x9e   : > { %v595_v4 = vadd.f32 %v1191_v32, %v483_v61 }
  0x9f   : > { %v610_v21 = vmax.f32 %v594_v15, 0.0 }
  0xa0   : > { %655 = vperm.xlu0 %1013, %v637_v57   ;;  %v611_v13 = vmax.f32 %v595_v4, 0.0 }
  0xa1   : > { %730 = vperm.xlu2 %1027, %v652_v58  }
  0xa2   : > { %v369_v63 = vpop.permute.xlu0 %368  ;;  %725 = vperm.xlu1 %1026, %v651_v60   ;;  %v430_v0 = vpop.permute.xlu1 %429 }
  0xa3   : > { %v387_v2 = vmul.f32 %v1243_v53, %v369_v63  ;;  %v463_v33 = vmul.f32 %v1245_v54, %v430_v0  ;;  %v638_v63 = vld [vmem:[%s1363_s4 + $0x8] sm:$0xff] }
  0xa5   : > { %v484_v5 = vadd.f32 %v468_v1, %v387_v2  ;;  %v559_v11 = vpop.permute.xlu2 %558  ;;  %v479_v47 = vadd.f32 %v463_v33, %v382_v39 }
  0xa7   : > { %v596_v10 = vadd.f32 %v579_v51, %v484_v5 }
  0xa9   : > { %v612_v14 = vmax.f32 %v596_v10, 0.0  ;;  %705 = vperm.xlu2 %1027, %v647_v9  }
  0xaa   : > { %v349_v16 = vpop.permute.xlu0 %348  ;;  %720 = vperm.xlu1 %1026, %v650_v12  }
  0xab   : > { %v564_v18 = vpop.permute.xlu1 %563  ;;  %v636_v19 = vpack.c.bf16 %v612_v14, %v611_v13  ;;  %v383_v27 = vmul.f32 %v1243_v53, %v349_v16 }
  0xac   : > { %v593_v20 = vadd.f32 %v564_v18, %v481_v17 }
  0xad   : > { %781 = vmatpush.bf16.msra.mxu0 %v636_v19  ;;  %977 = vmatpush.bf16.msra.mxu2 %v636_v19  ;;  %v329_v26 = vpop.permute.xlu2 %328  ;;  %v480_v34 = vadd.f32 %v464_v30, %v383_v27 }
  0xae   : > { %v609_v22 = vmax.f32 %v593_v20, 0.0  ;;  %978 = vmatpush.bf16.msra.mxu3 %v636_v19  ;;  %v379_v10 = vmul.f32 %v1243_v53, %v329_v26 }
  0xaf   : > { %v592_v43 = vadd.f32 %v559_v11, %v480_v34 }
  0xb0   : > { %v635_v25 = vpack.c.bf16 %v610_v21, %v609_v22 }
  0xb1   : > { %700 = vperm.xlu2 %1027, %v646_v23   ;;  %v608_v56 = vmax.f32 %v592_v43, 0.0 }
  0xb2   : > { %v334_v28 = vpop.permute.xlu0 %333  ;;  %695 = vperm.xlu1 %1026, %v645_v24   ;;  %782 = vmatpush.bf16.msra.mxu0 %v635_v25 }
  0xb3   : > { %979 = vmatpush.bf16.msra.mxu2 %v635_v25  ;;  %980 = vmatpush.bf16.msra.mxu3 %v635_v25  ;;  %v339_v29 = vpop.permute.xlu1 %338  ;;  %v380_v32 = vmul.f32 %v1243_v53, %v334_v28 }
  0xb4   : > { %v381_v35 = vmul.f32 %v1243_v53, %v339_v29 }
  0xb5   : > { %v477_v42 = vadd.f32 %v461_v31, %v380_v32  ;;  %v544_v48 = vpop.permute.xlu2 %543 }
  0xb6   : > { %v478_v46 = vadd.f32 %v462_v40, %v381_v35 }
  0xb7   : > { %v589_v50 = vadd.f32 %v544_v48, %v477_v42 }
  0xb9   : > { %675 = vperm.xlu2 %1027, %v641_v37   ;;  %v605_v57 = vmax.f32 %v589_v50, 0.0 }
  0xba   : > { %v549_v44 = vpop.permute.xlu0 %548  ;;  %690 = vperm.xlu1 %1026, %v644_v38  }
  0xbb   : > { %v554_v49 = vpop.permute.xlu1 %553  ;;  %v590_v51 = vadd.f32 %v549_v44, %v478_v46 }
  0xbc   : > { %v591_v52 = vadd.f32 %v554_v49, %v479_v47 }
  0xbd   : > { %v606_v58 = vmax.f32 %v590_v51, 0.0  ;;  %v319_v1 = vpop.permute.xlu2 %318 }
  0xbe   : > { %v607_v55 = vmax.f32 %v591_v52, 0.0  ;;  %v377_v26 = vmul.f32 %v1243_v53, %v319_v1 }
  0xbf   : > { %v633_v61 = vpack.c.bf16 %v606_v58, %v605_v57 }
  0xc0   : > { %v634_v59 = vpack.c.bf16 %v608_v56, %v607_v55 }
  0xc1   : > { %670 = vperm.xlu2 %1027, %v640_v36  }
  0xc2   : > { %665 = vperm.xlu1 %1026, %v639_v41   ;;  %783 = vmatpush.bf16.msra.mxu0 %v634_v59  ;;  %v534_v3 = vpop.permute.xlu0 %533 }
  0xc3   : > { %981 = vmatpush.bf16.msra.mxu2 %v634_v59  ;;  %982 = vmatpush.bf16.msra.mxu3 %v634_v59  ;;  %v324_v60 = vpop.permute.xlu1 %323 }
  0xc4   : > { %v378_v4 = vmul.f32 %v1243_v53, %v324_v60 }
  0xc6   : > { %784 = vmatpush.bf16.msra.mxu0 %v633_v61  ;;  %v410_v5 = vpop.permute.xlu2 %409  ;;  %v475_v8 = vadd.f32 %v459_v7, %v378_v4  ;;  %v970_v4 = vld [vmem:[%s1362_s3 + $0x8] sm:$0xff]  ;;  %v973_v7 = vld [vmem:[%s1362_s3 + $0x20] sm:$0xff] }
  0xc7   : > { %983 = vmatpush.bf16.msra.mxu2 %v633_v61  ;;  %984 = vmatpush.bf16.msra.mxu3 %v633_v61  ;;  %v458_v24 = vmul.f32 %v1245_v54, %v410_v5  ;;  %v972_v5 = vld [vmem:[%s1362_s3 + $0x18] sm:$0xff] }
  0xc8   : > { %v587_v12 = vadd.f32 %v534_v3, %v475_v8  ;;  %v974_v3 = vld [vmem:[%s1362_s3 + $0x28] sm:$0xff]  ;;  %v976_v8 = vld [vmem:[%s1362_s3 + $0x38] sm:$0xff] }
  0xc9   : > { %858 = vperm.xlu2 %1027, %v855_v62   ;;  %v474_v29 = vadd.f32 %v458_v24, %v377_v26 }
  0xca   : > { %660 = vperm.xlu1 %1026, %v638_v63   ;;  %v309_v11 = vpop.permute.xlu0 %308  ;;  %v603_v17 = vmax.f32 %v587_v12, 0.0 }
  0xcb   : > { %v375_v49 = vmul.f32 %v1243_v53, %v309_v11 }
  0xcc   : > { %v418_v0 = vpop.permute.xlu1 %417 }
  0xcd   : > { %v460_v9 = vmul.f32 %v1245_v54, %v418_v0 }
  0xcf   : > { %v304_v13 = vpop.permute.xlu2 %303  ;;  %v476_v14 = vadd.f32 %v460_v9, %v379_v10 }
  0xd0   : > { %v374_v42 = vmul.f32 %v1243_v53, %v304_v13 }
  0xd2   : > { %v524_v20 = vpop.permute.xlu0 %523 }
  0xd5   : > { %v314_v2 = vpop.permute.xlu1 %313 }
  0xd6   : > { %v376_v23 = vmul.f32 %v1243_v53, %v314_v2  ;;  %v971_v2 = vld [vmem:[%s1362_s3 + $0x10] sm:$0xff] }
  0xd8   : > { %v402_v21 = vpop.permute.xlu2 %401 }
  0xd9   : > { %v456_v44 = vmul.f32 %v1245_v54, %v402_v21 }
  0xda   : > { %v299_v31 = vpop.permute.xlu0 %298 }
  0xdb   : > { %v373_v50 = vmul.f32 %v1243_v53, %v299_v31  ;;  %v472_v56 = vadd.f32 %v456_v44, %v375_v49 }
  0xde   : > { %v406_v6 = vpop.permute.xlu1 %405 }
  0xdf   : > { %v457_v45 = vmul.f32 %v1245_v54, %v406_v6  ;;  %v975_v6 = vld [vmem:[%s1362_s3 + $0x30] sm:$0xff] }
  0xe1   : > { %v473_v25 = vadd.f32 %v457_v45, %v376_v23  ;;  %v294_v28 = vpop.permute.xlu2 %293 }
  0xe2   : > { %v514_v40 = vpop.permute.xlu0 %513  ;;  %v372_v46 = vmul.f32 %v1243_v53, %v294_v28  ;;  %v969_v53 = vld [vmem:[%s1362_s3] sm:$0xff] }
  0xe3   : > { %v585_v27 = vadd.f32 %v524_v20, %v473_v25 }
  0xe5   : > { %v601_v33 = vmax.f32 %v585_v27, 0.0 }
  0xe7   : > { %v539_v15 = vpop.permute.xlu1 %538 }
  0xe8   : > { %v588_v16 = vadd.f32 %v539_v15, %v476_v14 }
  0xea   : > { %v604_v18 = vmax.f32 %v588_v16, 0.0  ;;  %v394_v37 = vpop.permute.xlu2 %393  ;;  %v509_v59 = vpop.permute.xlu0 %508 }
  0xeb   : > { %v454_v47 = vmul.f32 %v1245_v54, %v394_v37 }
  0xec   : > { %v632_v19 = vpack.c.bf16 %v604_v18, %v603_v17 }
  0xed   : > { %v470_v52 = vadd.f32 %v454_v47, %v373_v50 }
  0xee   : > { %785 = vmatpush.bf16.msra.mxu0 %v632_v19  ;;  %985 = vmatpush.bf16.msra.mxu2 %v632_v19 }
  0xef   : > { %986 = vmatpush.bf16.msra.mxu3 %v632_v19  ;;  %v582_v60 = vadd.f32 %v509_v59, %v470_v52 }
  0xf0   : > { %v398_v22 = vpop.permute.xlu1 %397 }
  0xf1   : > { %v455_v38 = vmul.f32 %v1245_v54, %v398_v22 }
  0xf2   : > { %v716_v19 = vpop.permute.xlu0 %715 }
  0xf3   : > { %v471_v48 = vadd.f32 %v455_v38, %v374_v42  ;;  %v504_v36 = vpop.permute.xlu2 %503 }
  0xf5   : > { %v583_v55 = vadd.f32 %v514_v40, %v471_v48 }
  0xf7   : > { %v599_v61 = vmax.f32 %v583_v55, 0.0 }
  0xf9   : > { %v529_v30 = vpop.permute.xlu1 %528 }
  0xfa   : > { %v586_v32 = vadd.f32 %v529_v30, %v474_v29  ;;  %v711_v24 = vpop.permute.xlu0 %710 }
  0xfb   : > { %v731_v16 = vpop.permute.xlu2 %730 }
  0xfc   : > { %v602_v34 = vmax.f32 %v586_v32, 0.0 }
  0xfe   : > { %v631_v35 = vpack.c.bf16 %v602_v34, %v601_v33 }
 0x100   : > { %786 = vmatpush.bf16.msra.mxu0 %v631_v35  ;;  %987 = vmatpush.bf16.msra.mxu2 %v631_v35 }
 0x101   : > { %988 = vmatpush.bf16.msra.mxu3 %v631_v35 }
 0x102   : > { %v686_v40 = vpop.permute.xlu0 %685 }
 0x103   : > { %v390_v39 = vpop.permute.xlu1 %389  ;;  %v706_v45 = vpop.permute.xlu2 %705 }
 0x104   : > { %v453_v43 = vmul.f32 %v1245_v54, %v390_v39  ;;  %v598_v54 = vmax.f32 %v582_v60, 0.0 }
 0x106   : > { %v469_v51 = vadd.f32 %v453_v43, %v372_v46 }
 0x108   : > { %v581_v57 = vadd.f32 %v504_v36, %v469_v51 }
 0x10a   : > { %v597_v63 = vmax.f32 %v581_v57, 0.0  ;;  %v681_v59 = vpop.permute.xlu0 %680 }
 0x10b   : > { %v701_v28 = vpop.permute.xlu2 %700 }
 0x10c   : > { %v519_v41 = vpop.permute.xlu1 %518  ;;  %v629_v1 = vpack.c.bf16 %v598_v54, %v597_v63 }
 0x10d   : > { %v584_v58 = vadd.f32 %v519_v41, %v472_v56 }
 0x10f   : > { %v600_v62 = vmax.f32 %v584_v58, 0.0 }
 0x111   : > { %v630_v0 = vpack.c.bf16 %v600_v62, %v599_v61 }
 0x113   : > { %787 = vmatpush.bf16.msra.mxu0 %v630_v0  ;;  %989 = vmatpush.bf16.msra.mxu2 %v630_v0  ;;  %v676_v50 = vpop.permute.xlu2 %675 }
 0x114   : > { %990 = vmatpush.bf16.msra.mxu3 %v630_v0  ;;  %v726_v13 = vpop.permute.xlu1 %725 }
 0x117   : > { %788 = vmatpush.bf16.msra.mxu0 %v629_v1  ;;  %991 = vmatpush.bf16.msra.mxu2 %v629_v1 }
 0x118   : > { %992 = vmatpush.bf16.msra.mxu3 %v629_v1 }
 0x11a   : > { %789 = vmatmul.bf16.vlgmr.msra.gmra.mxu0 %v969_v53  ;;  %799 = vmatmul.bf16.vlgmr.msra.gmra.mxu2 %v971_v2 }
 0x11b   : > { %814 = vmatmul.bf16.vlgmr.msra.gmra.mxu3 %v974_v3  ;;  %v671_v1 = vpop.permute.xlu2 %670 }
 0x11c   : > { %v721_v17 = vpop.permute.xlu1 %720 }
 0x124   : > { %v696_v23 = vpop.permute.xlu1 %695 }
 0x12a   : > { %794 = vmatmul.bf16.gmra.mxu0 %v970_v4  ;;  %804 = vmatmul.bf16.gmra.mxu2 %v972_v5 }
 0x12b   : > { %819 = vmatmul.bf16.gmra.mxu3 %v975_v6 }
 0x12c   : > { %v691_v35 = vpop.permute.xlu1 %690 }
 0x134   : > { %v666_v41 = vpop.permute.xlu1 %665 }
 0x13a   : > { %809 = vmatmul.bf16.gmra.mxu2 %v973_v7 }
 0x13b   : > { %824 = vmatmul.bf16.gmra.mxu3 %v976_v8 }
 0x13c   : > { %v661_v6 = vpop.permute.xlu1 %660 }
 0x197   : > { %v790_v21 = vpop.f32.mrf.mxu0 }
 0x19d   : > { %v800_v9 = vpop.f32.mrf.mxu2 }
 0x19e   : > { %v815_v10 = vpop.f32.mrf.mxu3  ;;  %v801_v0 = vadd.f32 %v800_v9, %v676_v50 }
 0x19f   : > { %v792_v26 = vpop.f32.mrf.mxu0  ;;  %v816_v43 = vadd.f32 %v815_v10, %v706_v45 }
 0x1a0   : > { %v834_v4 = vmax.f32 %v801_v0, 0.0  ;;  %v793_v7 = vadd.f32 %v792_v26, %v661_v6 }
 0x1a1   : > { %v840_v51 = vmax.f32 %v816_v43, 0.0 }
 0x1a5   : > { %v802_v11 = vpop.f32.mrf.mxu2 }
 0x1a6   : > { %v817_v12 = vpop.f32.mrf.mxu3  ;;  %v803_v60 = vadd.f32 %v802_v11, %v681_v59 }
 0x1a7   : > { %v818_v37 = vadd.f32 %v817_v12, %v711_v24  ;;  %v795_v46 = vpop.f32.mrf.mxu0  ;;  %v656_v12 = vpop.permute.xlu0 %655 }
 0x1a8   : > { %v835_v53 = vmax.f32 %v803_v60, 0.0  ;;  %v796_v5 = vadd.f32 %v795_v46, %v666_v41  ;;  %v791_v11 = vadd.f32 %v790_v21, %v656_v12 }
 0x1a9   : > { %v841_v47 = vmax.f32 %v818_v37, 0.0 }
 0x1aa   : > { %v849_v10 = vpack.c.bf16 %v835_v53, %v834_v4 }
 0x1ab   : > { %v852_v36 = vpack.c.bf16 %v841_v47, %v840_v51 }
 0x1ad   : > { %v805_v14 = vpop.f32.mrf.mxu2 }
 0x1ae   : > { %v820_v15 = vpop.f32.mrf.mxu3  ;;  %v806_v57 = vadd.f32 %v805_v14, %v686_v40  ;;  %v831_v14 = vmax.f32 %v793_v7, 0.0 }
 0x1af   : > { %v821_v32 = vadd.f32 %v820_v15, %v716_v19  ;;  %v797_v63 = vpop.f32.mrf.mxu0  ;;  %v830_v15 = vmax.f32 %v791_v11, 0.0 }
 0x1b0   : > { %v836_v54 = vmax.f32 %v806_v57, 0.0  ;;  %v798_v2 = vadd.f32 %v797_v63, %v671_v1 }
 0x1b1   : > { %v842_v44 = vmax.f32 %v821_v32, 0.0 }
 0x1b2   : > { %v833_v8 = vmax.f32 %v798_v2, 0.0 }
 0x1b5   : > { %v807_v20 = vpop.f32.mrf.mxu2 }
 0x1b6   : > { %v822_v18 = vpop.f32.mrf.mxu3  ;;  %v808_v55 = vadd.f32 %v807_v20, %v691_v35 }
 0x1b7   : > { %v823_v30 = vadd.f32 %v822_v18, %v721_v17  ;;  %v846_v17 = vld [vmem:[%s1364_s5] sm:$0xf]  ;;  %v859_v18 = vpop.permute.xlu2 %858 }
 0x1b8   : > { %v837_v61 = vmax.f32 %v808_v55, 0.0 }
 0x1b9   : > { %v843_v38 = vmax.f32 %v823_v30, 0.0 }
 0x1ba   : > { %v850_v3 = vpack.c.bf16 %v837_v61, %v836_v54 }
 0x1bb   : > { %v853_v49 = vpack.c.bf16 %v843_v38, %v842_v44 }
 0x1bd   : > { %v810_v25 = vpop.f32.mrf.mxu2 }
 0x1be   : > { %v825_v22 = vpop.f32.mrf.mxu3  ;;  %v811_v52 = vadd.f32 %v810_v25, %v696_v23 }
 0x1bf   : > { %v826_v27 = vadd.f32 %v825_v22, %v726_v13  ;;  %v832_v13 = vmax.f32 %v796_v5, 0.0 }
 0x1c0   : > { %v838_v58 = vmax.f32 %v811_v52, 0.0 }
 0x1c1   : > { %v844_v33 = vmax.f32 %v826_v27, 0.0  ;;  %v848_v9 = vpack.c.bf16 %v833_v8, %v832_v13 }
 0x1c5   : > { %v812_v42 = vpop.f32.mrf.mxu2 }
 0x1c6   : > { %v827_v29 = vpop.f32.mrf.mxu3  ;;  %v813_v48 = vadd.f32 %v812_v42, %v701_v28 }
 0x1c7   : > { %v828_v31 = vadd.f32 %v827_v29, %v731_v16  ;;  %v847_v16 = vpack.c.bf16 %v831_v14, %v830_v15 }
 0x1c8   : > { %v839_v56 = vmax.f32 %v813_v48, 0.0 }
 0x1c9   : > { %v845_v34 = vmax.f32 %v828_v31, 0.0 }
 0x1ca   : > { %v851_v62 = vpack.c.bf16 %v839_v56, %v838_v58 }
 0x1cb   : > { %v854_v39 = vpack.c.bf16 %v845_v34, %v844_v33 }
 0x1cd   : > { %861 = vmatpush.bf16.msra.mxu1 %v854_v39 }
 0x1d1   : > { %862 = vmatpush.bf16.msra.mxu1 %v853_v49 }
 0x1d5   : > { %863 = vmatpush.bf16.msra.mxu1 %v852_v36 }
 0x1d9   : > { %864 = vmatpush.bf16.msra.mxu1 %v851_v62 }
 0x1dd   : > { %865 = vmatpush.bf16.msra.mxu1 %v850_v3 }
 0x1e1   : > { %866 = vmatpush.bf16.msra.mxu1 %v849_v10 }
 0x1e5   : > { %867 = vmatpush.bf16.msra.mxu1 %v848_v9 }
 0x1e9   : > { %868 = vmatpush.bf16.msra.mxu1 %v847_v16 }
 0x1ec   : > { %869 = vmatmul.bf16.vlgmr.msra.gmra.mxu1 %v846_v17 }
 0x269   : > { %v870_v19 = vpop.f32.mrf.mxu1 }
 0x26a   : > { %v871_v20 = vadd.f32 %v870_v19, %v859_v18 }
 0x26c   : > { %874 = vst [vmem:[%s273_s21] sm:$0xff] %v871_v20 }
 0x271   : > { %v872_v21 = vpop.f32.mrf.mxu1 }
 0x272 PF: > { %s17_s24 = sadd.s32 1, %s1034_s24  }
 0x273   : > { %p14_p4 = scmp.ge.s32.totalorder %s17_s24, 5  }
 0x275   :  { %16 = sbr.rel (!%p14_p4) target bundleno = 1 (0x1), region = 78 }

</bundles_post_ra>
